<compile_context>
chip_gen: v5e
topology: v5e:2x2
jax: 0.10.0
libtpu: 0.0.40
codegen_flags: <defaults>
</compile_context>

<pallas_src>
from functools import partial

import jax
import jax.numpy as jnp
from jax.experimental import pallas as pl
from jax.experimental.pallas import tpu as pltpu


def _moo_identity_kernel(g_ref, o_ref):
    # Base-class semantics: new_grads has exactly the shape/dtype of grads.
    # With no criterion defined on the abstract class, the transform is identity.
    o_ref[...] = g_ref[...]


def _pick_tile_d(D: int, K: int, itemsize: int, target_block_bytes: int) -> int:
    """Lane-dense column tile: a multiple of 128 (or == D), sized ~target bytes,
    and capped so the grid has >= 2 steps when D allows (keeps both v7x
    TensorCores streaming)."""
    if D <= 512:
        # Single block covering the whole (small) array; block dims equal the
        # full array dims so the (8, 128) rule is trivially satisfied.
        return D
    bytes_per_col = K * itemsize
    tile = (target_block_bytes // bytes_per_col // 128) * 128
    tile = max(128, tile)
    # Guarantee >= 2 grid steps.
    half = max(128, ((D // 2) // 128) * 128)
    return min(tile, half)


def _moo_pallas_identity(grads, tile_d: int, vmem_limit_bytes):
    K, D = grads.shape
    itemsize = jnp.dtype(grads.dtype).itemsize
    grid = pl.cdiv(D, tile_d)
    return pl.pallas_call(
        _moo_identity_kernel,
        out_shape=jax.ShapeDtypeStruct((K, D), grads.dtype),
        grid_spec=pl.GridSpec(
            grid=(grid,),
            in_specs=[pl.BlockSpec((K, tile_d), lambda j: (0, j))],
            out_specs=pl.BlockSpec((K, tile_d), lambda j: (0, j)),
        ),
        compiler_params=pltpu.CompilerParams(
            dimension_semantics=("parallel",),
            vmem_limit_bytes=vmem_limit_bytes,
        ),
        cost_estimate=pl.CostEstimate(
            flops=0,
            transcendentals=0,
            bytes_accessed=2 * K * D * itemsize,
        ),
    )(grads)


@partial(jax.jit, static_argnames=("target_block_bytes", "small_bypass_bytes"))
def moo_method_forward(
    grads,
    inputs=None,
    outputs=None,
    *,
    target_block_bytes: int = 2 * 1024 * 1024,  # 2 MiB blocks: safe on v5e/v6e/v7x scoped VMEM
    small_bypass_bytes: int = 256 * 1024,       # skip the kernel for tiny gradient matrices
):
    """Pallas equivalent of MOOMethod.forward (abstract base => identity map).

    Args:
        grads:   (K, D) array of per-task gradients.
        inputs:  unused (requires_input is False on the base class).
        outputs: unused (documented as NOT used at the moment).

    Returns:
        (K, D) array of new task gradients (same shape/dtype as `grads`).
    """
    del inputs, outputs  # base class does not consume them
    K, D = grads.shape
    itemsize = jnp.dtype(grads.dtype).itemsize

    # For tiny problems the launch / pipeline prologue dominates and the
    # identity result is available for free.
    if small_bypass_bytes and K * D * itemsize <= small_bypass_bytes:
        return grads

    tile_d = _pick_tile_d(D, K, itemsize, target_block_bytes)
    block_bytes = K * tile_d * itemsize
    # Double-buffered input + output ~= 4x the block footprint; only raise the
    # scoped VMEM limit when the default (16 MiB on v5e) would be tight.
    footprint = 4 * block_bytes + (2 << 20)
    vmem_limit = footprint if footprint > (16 << 20) else None

    return _moo_pallas_identity(grads, tile_d, vmem_limit)


if __name__ == "__main__":
    key = jax.random.PRNGKey(0)
    k1, k2, k3, kx = jax.random.split(key, 4)

    # K tasks x flattened param dim D; D deliberately NOT a multiple of 128 so
    # the masked-last-block path is exercised (no wrapper padding needed).
    K, D = 8, 1000
    grads = jax.random.normal(k1, (K, D), dtype=jnp.float32)
    # `inputs` is optional (requires_input = False) — pass something plausible.
    inputs = jax.random.normal(kx, (2, 32), dtype=jnp.float32)

    # 1) Force the Pallas kernel (bypass disabled): direct (K, TILE_D) tiling,
    #    multi-step parallel grid, masked last block.
    out = moo_method_forward(grads, inputs=inputs, outputs=None,
                             small_bypass_bytes=0)
    out = jax.block_until_ready(out)
    assert out.shape == grads.shape
    assert out.dtype == grads.dtype
    assert bool(jnp.array_equal(out, grads))

    # 2) bf16 with tiny target blocks -> several grid steps + masked last block,
    #    K below the native sublane tile (full-dim block, no relayout needed).
    grads_bf16 = jax.random.normal(k2, (4, 600), dtype=jnp.bfloat16)
    out_bf16 = moo_method_forward(grads_bf16, target_block_bytes=4096,
                                  small_bypass_bytes=0)
    out_bf16 = jax.block_until_ready(out_bf16)
    assert out_bf16.shape == grads_bf16.shape
    assert out_bf16.dtype == grads_bf16.dtype
    assert bool(jnp.array_equal(out_bf16, grads_bf16))

    # 3) Default small-problem bypass: identity returned without a kernel launch.
    grads_small = jax.random.normal(k3, (3, 257), dtype=jnp.float32)
    out_small = jax.block_until_ready(moo_method_forward(grads_small))
    assert bool(jnp.array_equal(out_small, grads_small))

    print("KERNEL_OK")
</pallas_src>

<mosaic_0001>
module attributes {stable_mosaic.version = 11 : i64} {
  func.func @_moo_identity_kernel(%arg0: i32, %arg1: memref<8x384xf32, #tpu.memory_space<vmem>>, %arg2: memref<8x384xf32, #tpu.memory_space<vmem>>) attributes {dimension_semantics = [#tpu.dimension_semantics<parallel>], iteration_bounds = array<i64: 3>, scalar_prefetch = 0 : i64, scratch_operands = 0 : i64, tpu.core_type = #tpu.core_type<tc>, window_params = [{transform_indices = @transform_0, window_bounds = array<i64: 8, 384>}, {transform_indices = @transform_1, window_bounds = array<i64: 8, 384>}]} {
    %c0 = arith.constant 0 : index
    %c0_0 = arith.constant 0 : index
    %0 = vector.load %arg1[%c0, %c0_0] : memref<8x384xf32, #tpu.memory_space<vmem>>, vector<8x384xf32>
    %c0_1 = arith.constant 0 : index
    %c0_2 = arith.constant 0 : index
    %1 = vector.load %arg2[%c0_1, %c0_2] : memref<8x384xf32, #tpu.memory_space<vmem>>, vector<8x384xf32>
    tpu.vector_store %arg2[%c0_1, %c0_2], %0 {strides = array<i32>} : memref<8x384xf32, #tpu.memory_space<vmem>>, vector<8x384xf32>,
    return
  }
  func.func @transform_0(%arg0: i32) -> (i32, i32) {
    %c0_i32 = arith.constant 0 : i32
    %c0_i32_0 = arith.constant 0 : i32
    return %c0_i32, %arg0 : i32, i32
  }
  func.func @transform_1(%arg0: i32) -> (i32, i32) {
    %c0_i32 = arith.constant 0 : i32
    %c0_i32_0 = arith.constant 0 : i32
    return %c0_i32, %arg0 : i32, i32
  }
}

</mosaic_0001>

<bundles_post_ra>
// kernel: moo_method_forward.1
= control target key start
LH: loop header
LB: loop body
LE: loop exit
PB: predicated region body
PF: predicated region fallthrough
CT: control target
= control target key end

     0   :  { %6 = vsyncpa [#allocation3], 0  ;;  %s603_s0 = inlined_call_operand.hbm [shape: f32[8,1000], index: 0, kind: input, shape index: {}]   ;;  %s604_s1 = inlined_call_operand.hbm [shape: f32[8,1000], index: 1, kind: output, shape index: {}]  }
   0x1   :  { %8 = vsyncpa [#allocation3 + $0x1], 0 }
   0x2   :  { %9 = vsyncpa [#allocation4], 0 }
   0x3   :  { %11 = vsyncpa [#allocation4 + $0x1], 0  ;;  %s441_s6 = smov 0   ;;  %s443_s7 = smov 0  }
   0x4   :  { %s445_s8 = smov 0   ;;  %s447_s9 = smov 0  }
   0x5 LB: > { %s462_s10 = sadd.s32 4294967295, %s427_s9   ;;  %s252_s11 = sadd.s32 4294967294, %s427_s9   ;;  %s427_s9 = sphi %s447_s9, %s613_s9   ;;  %s423_s8 = sphi %s445_s8, %s612_s8   ;;  %s419_s7 = sphi %s443_s7, %s611_s7   ;;  %s415_s6 = sphi %s441_s6, %s610_s6  }
   0x6   : > { %s466_s12 = sadd.s32 1, %s427_s9   ;;  %s24_s13 = sadd.s32 1, %s423_s8 }
   0x7   : > { %s21_s14 = ssub.s32 %s427_s9, %s466_s12  ;;  %p31_p0 = scmp.ne.s32.totalorder %s423_s8, %s419_s7 }
   0x8   : > { %p22_p1 = scmp.eq.s32.totalorder %s21_s14, 0  ;;  %p32_p2 = scmp.eq.s32.totalorder %s427_s9, 0 }
   0x9   : > { %p37_p3 = scmp.ne.s32.totalorder %s419_s7, %s415_s6  ;;  %p38_p4 = scmp.eq.s32.totalorder %s462_s10, 0 }
   0xa   : > { %s478_s15 = scalar_select %p22_p1, %s423_s8, %s24_s13  }
   0xb   : > { %p33_p5 = por %p32_p2, %p31_p0  ;;  %p480_p6 = por %p38_p4, %p37_p3 }
   0xc   : > { %p61_p7 = scmp.eq.s32.totalorder %s462_s10, 2  ;;  %p67_p8 = scmp.eq.s32.totalorder %s252_s11, 2 }
   0xd   : > { %p254_p11 = scmp.ge.s32.totalorder %s427_s9, 3 }
   0xe   : > { %p485_p9 = por %p61_p7, %p31_p0  ;;  %p489_p10 = por %p67_p8, %p37_p3 }
   0xf   : > { %83 = sbr.rel (%p254_p11) target bundleno = 57 (0x39), region = 16 }
  0x14   : > { %86 = sbr.rel (!%p33_p5) target bundleno = 57 (0x39), region = 20  ;;  %s87_s19 = sand.u32 (%p33_p5), 1, %s423_s8  }
  0x15   : > { %s92_s20 = smul.u32 (%p33_p5), 3, %s427_s9  ;;  %s499_s26 = scalar_lea.sflag (%p33_p5), [#allocation3], %s87_s19 }
  0x16   : > { %s270_s21 = smul.u32 (%p33_p5), 24, %s87_s19 }
  0x17   : > { %s93_s22 = ssub.s32 (%p33_p5), 8, %s92_s20 }
  0x18   : > { %p94_p12 = scmp.lt.s32.totalorder (%p33_p5), %s93_s22, 3  ;;  %s91_s27 = scalar_lea.vmem (%p33_p5), [#allocation2], %s270_s21 }
  0x1a   : > { %s615_s22 = smov (!%p94_p12, %s93_s22), 3 }
  0x1b   : > { %s255_s23 = sshll.u32 %s615_s22, 3 }
  0x1c   : > { %s97_s24 = ssub.s32 24, %s255_s23 }
  0x1d   : > { %s98_s25 = sshll.u32 %s97_s24, 4 }
  0x1e   : > { %99 = vsyncadd %s499_s26, %s98_s25  ;;  %p502_p13 = scmp.ne.s32.totalorder %s255_s23, 0  ;;  %s268_s29 = smul.u32 24, %s427_s9 }
  0x1f   : > { %s259_s30 = sshll.u32 %s615_s22, 7  ;;  %s508_s2 = sshll.u32 %s91_s27, 4  ;;  %s108_s2 = int_to_ptr.vmem [resolvable:$true] %s508_s2 }
  0x20   : > { %s102_s5 = scalar_lea.hbm %s603_s0, %s268_s29  ;;  %s313_s14 = sshrl.u32 %s259_s30, 4 }
  0x21   : > { %s105_s11 = sshll.u32 %s102_s5, 4  ;;  %s322_s23 = scalar_lea.hbm %s603_s0, 64  ;;  %s106_s11 = int_to_ptr.hbm [resolvable:$true] %s105_s11 }
  0x22   : > { %s311_s13 = sshra.s32 %s106_s11, 4  ;;  %s312_s13 = int_to_ptr.hbm [resolvable:$true] %s311_s13 }
  0x23   : > { %s318_s19 = scalar_lea.hbm %s312_s13, %s313_s14  ;;  %p323_p3 = scmp.lt.s32.totalorder %s312_s13, %s603_s0 }
  0x24   : > { %p319_p0 = scmp.ne.s32.totalorder %s312_s13, %s318_s19  ;;  %p324_p4 = scmp.lt.s32.totalorder %s322_s23, %s318_s19 }
  0x26   : > { %p320_p1 = pnand %p319_p0, %p502_p13  ;;  %p325_p5 = por %p324_p4, %p323_p3 }
  0x28   : > { %p321_p2 = pneg %p320_p1 }
  0x2a   : > { %p326_p7 = pnand %p325_p5, %p321_p2 }
  0x2c   : > { %329 = shalt.err (!%p326_p7)
}
  0x2d   : > { %s330_s27 = sshra.s32 %s108_s2, 4  ;;  %s429_s3 = smov [#allocation2]   ;;  %s331_s27 = int_to_ptr.vmem [resolvable:$true] %s330_s27 }
  0x2e   : > { %s337_s29 = scalar_lea.vmem %s331_s27, %s313_s14  ;;  %s341_s4 = scalar_lea.vmem %s429_s3, 48 }
  0x2f   : > { %p338_p8 = scmp.ne.s32.totalorder %s331_s27, %s337_s29  ;;  %p343_p0 = scmp.lt.s32.totalorder %s341_s4, %s337_s29 }
  0x31   : > { %p339_p11 = pnand %p338_p8, %p502_p13 }
  0x33   : > { %p340_p12 = pneg %p339_p11 }
  0x35   : > { %p345_p1 = pnand %p343_p0, %p340_p12 }
  0x37   : > { %348 = shalt.err (!%p345_p1)
}
  0x38   : > { %110 = dma.hbm_to_vmem [thread:$0]  (%p502_p13), %s106_s11, %s259_s30, %s108_s2, %s499_s26  }
  0x39 PF: > { %p260_p2 = scmp.ge.s32.totalorder %s427_s9, 1  ;;  %p112_p3 = scmp.lt.s32.totalorder %s427_s9, 4 }
  0x3b   : > { %p113_p4 = pnand %p260_p2, %p112_p3 }
  0x3c   : > { %s538_s5 = sand.u32 (!%p113_p4), 1, %s419_s7  }
  0x3d   : > { %116 = sbr.rel (%p113_p4) target bundleno = 104 (0x68), region = 24  ;;  %s119_s13 = scalar_lea.sflag (!%p113_p4), [#allocation3], %s538_s5 }
  0x3e   : > { %s271_s28 = smul.u32 (!%p113_p4), 24, %s538_s5 }
  0x40   : > { %s122_s14 = scalar_lea.vmem (!%p113_p4), [#allocation2], %s271_s28 }
  0x42   : > { %406 = dma.done.wait (%p480_p6), %s119_s13, 384  }
  0x43   : > { %408 = vsyncadd (%p480_p6), %s119_s13, 4294966912  ;;  %v152_v0 = vld [vmem:[%s122_s14] sm:$0xff]  ;;  %v153_v1 = vld [vmem:[%s122_s14 + $0x8] sm:$0xff]  ;;  %s141_s22 = scalar_lea.vmem [#allocation5], %s271_s28  ;;  %s159_s26 = scalar_lea.sflag [#allocation4], %s538_s5 }
  0x44   : > { %v154_v2 = vld [vmem:[%s122_s14 + $0x10] sm:$0xff]  ;;  %155 = vst [vmem:[%s141_s22] sm:$0xff] %v152_v0  ;;  %165 = sbr.rel (!%p485_p9) target bundleno = 104 (0x68), region = 32 }
  0x45   : > { %156 = vst [vmem:[%s141_s22 + $0x8] sm:$0xff] %v153_v1  ;;  %s166_s30 = smul.u32 (%p485_p9), 3, %s462_s10 }
  0x46   : > { %157 = vst [vmem:[%s141_s22 + $0x10] sm:$0xff] %v154_v2 }
  0x47   : > { %s167_s2 = ssub.s32 (%p485_p9), 8, %s166_s30 }
  0x48   : > { %p168_p13 = scmp.lt.s32.totalorder (%p485_p9), %s167_s2, 3 }
  0x4a   : > { %s617_s2 = smov (!%p168_p13, %s167_s2), 3 }
  0x4b   : > { %s261_s16 = sshll.u32 %s617_s2, 3 }
  0x4c   : > { %s171_s11 = ssub.s32 24, %s261_s16 }
  0x4d   : > { %s172_s19 = sshll.u32 %s171_s11, 4 }
  0x4e   : > { %173 = vsyncadd %s159_s26, %s172_s19  ;;  %p555_p6 = scmp.ne.s32.totalorder %s261_s16, 0  ;;  %s269_s17 = smul.u32 24, %s462_s10 }
  0x4f   : > { %s265_s21 = sshll.u32 %s617_s2, 7  ;;  %s179_s23 = sshll.u32 %s141_s22, 4  ;;  %s564_s23 = int_to_ptr.vmem [resolvable:$true] %s179_s23 }
  0x50   : > { %s176_s27 = scalar_lea.hbm %s604_s1, %s269_s17  ;;  %s350_s3 = sshra.s32 %s564_s23, 4  ;;  %s351_s3 = int_to_ptr.vmem [resolvable:$true] %s350_s3 }
  0x51   : > { %s181_s29 = sshll.u32 %s176_s27, 4  ;;  %s352_s4 = sshrl.u32 %s265_s21, 4  ;;  %s182_s29 = int_to_ptr.hbm [resolvable:$true] %s181_s29 }
  0x52   : > { %s357_s28 = scalar_lea.vmem %s351_s3, %s352_s4  ;;  %s430_s10 = smov [#allocation5]  }
  0x53   : > { %p358_p9 = scmp.ne.s32.totalorder %s351_s3, %s357_s28  ;;  %s361_s13 = scalar_lea.vmem %s430_s10, 48 }
  0x54   : > { %p363_p8 = scmp.lt.s32.totalorder %s361_s13, %s357_s28 }
  0x55   : > { %p359_p5 = pnand %p358_p9, %p555_p6 }
  0x57   : > { %p360_p7 = pneg %p359_p5 }
  0x59   : > { %p365_p11 = pnand %p363_p8, %p360_p7 }
  0x5b   : > { %368 = shalt.err (!%p365_p11)
}
  0x5c   : > { %s369_s14 = sshra.s32 %s182_s29, 4  ;;  %s380_s11 = scalar_lea.hbm %s604_s1, 64  ;;  %s370_s14 = int_to_ptr.hbm [resolvable:$true] %s369_s14 }
  0x5d   : > { %s376_s22 = scalar_lea.hbm %s370_s14, %s352_s4  ;;  %p381_p2 = scmp.lt.s32.totalorder %s370_s14, %s604_s1 }
  0x5e   : > { %p377_p12 = scmp.ne.s32.totalorder %s370_s14, %s376_s22  ;;  %p382_p3 = scmp.lt.s32.totalorder %s380_s11, %s376_s22 }
  0x60   : > { %p378_p0 = pnand %p377_p12, %p555_p6  ;;  %p383_p4 = por %p382_p3, %p381_p2 }
  0x62   : > { %p379_p1 = pneg %p378_p0 }
  0x64   : > { %p384_p13 = pnand %p383_p4, %p379_p1 }
  0x66   : > { %387 = shalt.err (!%p384_p13)
}
  0x67   : > { %184 = dma.vmem_to_hbm [thread:$0]  (%p555_p6), %s564_s23, %s265_s21, %s182_s29, %s159_s26  }
  0x68 PF: > { %p278_p9 = scmp.ge.s32.totalorder %s427_s9, 2  ;;  %s193_s24 = sand.u32 1, %s415_s6  }
  0x69   : > { %s194_s25 = scalar_lea.sflag [#allocation4], %s193_s24 }
  0x6a   : > { %p275_p5 = pnand %p278_p9, %p489_p10 }
  0x6c   : > { %p276_p7 = pneg %p275_p5 }
  0x6e   : > { %410 = dma.done.wait (%p276_p7), %s194_s25, 384  }
  0x6f   : > { %412 = vsyncadd (%p276_p7), %s194_s25, 4294966912  ;;  %p14_p8 = scmp.ge.s32.totalorder %s466_s12, 5   ;;  %s610_s6 = smov %s419_s7 }
  0x70   : > { %s611_s7 = smov %s423_s8  ;;  %s612_s8 = smov %s478_s15 }
  0x71   : > { %s613_s9 = smov %s466_s12  ;;  %16 = sbr.rel (!%p14_p8) target bundleno = 5 (0x5), region = 69 }
  0x76   :  { %200 = vsyncpa [#allocation3], 1 }
  0x77   :  { %202 = vsyncpa [#allocation3 + $0x1], 1 }
  0x78   :  { %203 = vsyncpa [#allocation4], 1 }
  0x79   :  { %205 = vsyncpa [#allocation4 + $0x1], 1 }

</bundles_post_ra>
